<compile_context>
chip_gen: v7x
topology: tpu7x:2x2x1
jax: 0.10.0
libtpu: 0.0.40
codegen_flags: <defaults>
</compile_context>

<pallas_src>
import jax
import jax.numpy as jnp
from jax.experimental import pallas as pl
from jax.experimental.pallas import tpu as pltpu

LANE = 128


def _round_up(x, m):
    return (x + m - 1) // m * m


# --------------------------------------------------------------------------
# Kernel: per-object MLP + running max over the object axis.
# --------------------------------------------------------------------------
def _encoder_kernel(x_ref, w1_ref, b1_ref, w2_ref, b2_ref, o_ref):
    """x_ref : (tile_b, N*D_pad) bf16 -- object n lives in lanes [n*D_pad,(n+1)*D_pad)
       o_ref : (tile_b, H_pad)   f32  -- max-aggregated activations (lane-dense)."""
    d_pad = w1_ref.shape[0]
    n_obj = x_ref.shape[1] // d_pad

    w1 = w1_ref[...]
    b1 = b1_ref[...]
    w2 = w2_ref[...]
    b2 = b2_ref[...]

    acc = None
    for n in range(n_obj):                       # static unroll; N is small
        xo = x_ref[:, n * d_pad:(n + 1) * d_pad]             # lane-aligned static slice
        h = jnp.dot(xo, w1, preferred_element_type=jnp.float32) + b1
        h = jnp.maximum(h, 0.0)
        h = jnp.dot(h.astype(w2.dtype), w2,
                    preferred_element_type=jnp.float32) + b2
        h = jnp.maximum(h, 0.0)
        acc = h if acc is None else jnp.maximum(acc, h)       # VPU max accumulator

    o_ref[...] = acc.astype(o_ref.dtype)


# --------------------------------------------------------------------------
# Generation-aware VMEM budgeting + tile sizing.
# --------------------------------------------------------------------------
def _vmem_budget():
    try:
        cap = int(pltpu.get_tpu_info().vmem_capacity_bytes)
    except Exception:
        cap = 64 << 20                       # conservative fallback: v7x per-TC VMEM
    budget = min(max(cap // 4, 8 << 20), 48 << 20)   # kernel working-set target
    limit = min(cap * 3 // 4, 96 << 20)              # scoped-VMEM limit with headroom
    return budget, limit


def _auto_tile_b(B, N, d_pad, h_pad, budget_bytes):
    bf16, f32 = 2, 4
    per_row = (2 * N * d_pad * bf16          # double-buffered bf16 x block
               + 2 * h_pad * f32             # double-buffered f32 output block
               + 4 * h_pad * f32             # live f32 intermediates (h, acc, ...)
               + d_pad * bf16)               # per-object bf16 slice
    resident = 2 * ((d_pad * h_pad + h_pad * h_pad) * bf16 + 2 * h_pad * f32)
    avail = max(budget_bytes - resident, 8 * per_row)
    tile_b = max(8, min(avail // per_row, 512) // 8 * 8)      # multiple of 8
    if B > 8:    # keep >= 2 "parallel" grid steps so both v7x TensorCores get work
        tile_b = min(tile_b, max(8, _round_up(-(-B // 2), 8)))
    return tile_b


# --------------------------------------------------------------------------
# Parameter preparation (padding, bf16 cast, head+decoder fusion) -- hoisted
# out of the per-call path.
# --------------------------------------------------------------------------
def prepare_params(params):
    d_in, h_dim = params["w1"].shape
    d_pad, h_pad = _round_up(d_in, LANE), _round_up(h_dim, LANE)

    def pad2(a, r, c, dtype):
        out = jnp.zeros((r, c), dtype)
        return out.at[:a.shape[0], :a.shape[1]].set(a.astype(dtype))

    weq = params["w3"] @ params["wd"]                        # (H, 1)
    beq = params["b3"] @ params["wd"] + params["bd"]         # (1, 1)
    return {
        "d_in": d_in, "h_dim": h_dim, "d_pad": d_pad, "h_pad": h_pad,
        "w1": pad2(params["w1"], d_pad, h_pad, jnp.bfloat16),
        "b1": pad2(params["b1"], 1, h_pad, jnp.float32),
        "w2": pad2(params["w2"], h_pad, h_pad, jnp.bfloat16),
        "b2": pad2(params["b2"], 1, h_pad, jnp.float32),
        "weq": pad2(weq, h_pad, 1, jnp.float32),
        "beq": beq.astype(jnp.float32),
    }


# --------------------------------------------------------------------------
# Forward pass.
# --------------------------------------------------------------------------
def crafting_world_value_net(x, prep, *, tile_b=None):
    """x: (B, N, D) float32 -> (B,) float32 (decoder output, squeezed)."""
    B, N, D = x.shape
    assert D == prep["d_in"]
    d_pad, h_pad = prep["d_pad"], prep["h_pad"]

    budget, vmem_limit = _vmem_budget()
    if tile_b is None:
        tile_b = _auto_tile_b(B, N, d_pad, h_pad, budget)
    assert tile_b % 8 == 0
    B_pad = _round_up(B, tile_b)
    num_tiles = B_pad // tile_b

    # Zero-pad batch / feature dims (exact: padded features hit zero weight
    # rows, padded batch rows are sliced off below) and flatten the object
    # axis into the lane axis -- this reshape is a free, contiguous wrapper op.
    x_p = jnp.zeros((B_pad, N, d_pad), jnp.bfloat16)
    x_p = x_p.at[:B, :, :D].set(x.astype(jnp.bfloat16))
    x_p = x_p.reshape(B_pad, N * d_pad)

    flops = 2 * B_pad * N * (d_pad * h_pad + h_pad * h_pad)
    bytes_accessed = (x_p.size * 2
                      + (d_pad * h_pad + h_pad * h_pad) * 2 + 2 * h_pad * 4
                      + B_pad * h_pad * 4)

    const = lambda i: (0, 0)   # loop-invariant weight/bias blocks
    h_agg = pl.pallas_call(
        _encoder_kernel,
        out_shape=jax.ShapeDtypeStruct((B_pad, h_pad), jnp.float32),
        grid_spec=pl.GridSpec(
            grid=(num_tiles,),
            in_specs=[
                pl.BlockSpec((tile_b, N * d_pad), lambda i: (i, 0)),  # x tile
                pl.BlockSpec((d_pad, h_pad), const),                  # w1
                pl.BlockSpec((1, h_pad), const),                      # b1
                pl.BlockSpec((h_pad, h_pad), const),                  # w2
                pl.BlockSpec((1, h_pad), const),                      # b2
            ],
            out_specs=pl.BlockSpec((tile_b, h_pad), lambda i: (i, 0)),
        ),
        compiler_params=pltpu.CompilerParams(
            dimension_semantics=("parallel",),
            vmem_limit_bytes=int(vmem_limit)),
        cost_estimate=pl.CostEstimate(
            flops=flops, transcendentals=0, bytes_accessed=bytes_accessed),
    )(x_p, prep["w1"], prep["b1"], prep["w2"], prep["b2"])

    # Fused encoder head + value decoder:  v = (h@w3 + b3)@wd + bd = h@weq + beq
    v = h_agg @ prep["weq"] + prep["beq"]
    return v[:B, 0]


# --------------------------------------------------------------------------
# Demo / correctness check.
# --------------------------------------------------------------------------
def init_params(key, d_in, h_dim):
    ks = jax.random.split(key, 8)
    scale = lambda fan_in: 1.0 / jnp.sqrt(jnp.float32(fan_in))
    return {
        "w1": jax.random.normal(ks[0], (d_in, h_dim), jnp.float32) * scale(d_in),
        "b1": jax.random.normal(ks[1], (1, h_dim), jnp.float32) * 0.1,
        "w2": jax.random.normal(ks[2], (h_dim, h_dim), jnp.float32) * scale(h_dim),
        "b2": jax.random.normal(ks[3], (1, h_dim), jnp.float32) * 0.1,
        "w3": jax.random.normal(ks[4], (h_dim, h_dim), jnp.float32) * scale(h_dim),
        "b3": jax.random.normal(ks[5], (1, h_dim), jnp.float32) * 0.1,
        "wd": jax.random.normal(ks[6], (h_dim, 1), jnp.float32) * scale(h_dim),
        "bd": jax.random.normal(ks[7], (1, 1), jnp.float32) * 0.1,
    }


def _reference_f32(x, p):
    h = jnp.maximum(x @ p["w1"] + p["b1"][0], 0.0)
    h = jnp.maximum(h @ p["w2"] + p["b2"][0], 0.0)
    h = jnp.max(h, axis=1)
    h = h @ p["w3"] + p["b3"][0]
    v = h @ p["wd"] + p["bd"][0]
    return v[:, 0]


def _reference_bf16(x, p):
    """Same math with the kernel's bf16 input casts (tight-tolerance check)."""
    bf = jnp.bfloat16
    h = jnp.einsum("bnd,dh->bnh", x.astype(bf), p["w1"].astype(bf),
                   preferred_element_type=jnp.float32) + p["b1"][0]
    h = jnp.maximum(h, 0.0)
    h = jnp.einsum("bnh,hk->bnk", h.astype(bf), p["w2"].astype(bf),
                   preferred_element_type=jnp.float32) + p["b2"][0]
    h = jnp.maximum(h, 0.0)
    h = jnp.max(h, axis=1)
    h = h @ p["w3"] + p["b3"][0]
    v = h @ p["wd"] + p["bd"][0]
    return v[:, 0]


if __name__ == "__main__":
    B, N, D, H = 16, 8, 16, 32      # batch, objects, object-feature dim, h_dim
    key = jax.random.PRNGKey(0)
    kx, kp = jax.random.split(key)
    x = jax.random.normal(kx, (B, N, D), jnp.float32)
    params = init_params(kp, D, H)
    prep = prepare_params(params)

    y = crafting_world_value_net(x, prep)   # tile_b auto -> 2 parallel grid steps
    y = jax.block_until_ready(y)
    assert y.shape == (B,)

    # Tight check against a JAX reference with identical bf16 input casts.
    y_bf16 = _reference_bf16(x, params)
    assert jnp.allclose(y, y_bf16, atol=2e-3, rtol=2e-3), "bf16-reference mismatch"

    # Loose check against the pure-f32 module semantics (bf16 quantization noise).
    y_f32 = _reference_f32(x, params)
    assert jnp.allclose(y, y_f32, atol=5e-2, rtol=5e-2), "f32-reference mismatch"

    print("KERNEL_OK")
</pallas_src>

<mosaic_0001>
module attributes {stable_mosaic.version = 11 : i64} {
  func.func @_encoder_kernel(%arg0: i32, %arg1: memref<8x1024xbf16, #tpu.memory_space<vmem>>, %arg2: memref<128x128xbf16, #tpu.memory_space<vmem>>, %arg3: memref<1x128xf32, #tpu.memory_space<vmem>>, %arg4: memref<128x128xbf16, #tpu.memory_space<vmem>>, %arg5: memref<1x128xf32, #tpu.memory_space<vmem>>, %arg6: memref<8x128xf32, #tpu.memory_space<vmem>>) attributes {dimension_semantics = [#tpu.dimension_semantics<parallel>], iteration_bounds = array<i64: 2>, scalar_prefetch = 0 : i64, scratch_operands = 0 : i64, tpu.core_type = #tpu.core_type<tc>, window_params = [{transform_indices = @transform_0, window_bounds = array<i64: 8, 1024>}, {pipeline_mode = #tpu.pipeline_mode<synchronous>, transform_indices = @transform_1, window_bounds = array<i64: 128, 128>}, {pipeline_mode = #tpu.pipeline_mode<synchronous>, transform_indices = @transform_2, window_bounds = array<i64: 1, 128>}, {pipeline_mode = #tpu.pipeline_mode<synchronous>, transform_indices = @transform_3, window_bounds = array<i64: 128, 128>}, {pipeline_mode = #tpu.pipeline_mode<synchronous>, transform_indices = @transform_4, window_bounds = array<i64: 1, 128>}, {transform_indices = @transform_5, window_bounds = array<i64: 8, 128>}]} {
    %c0 = arith.constant 0 : index
    %c0_0 = arith.constant 0 : index
    %0 = vector.load %arg2[%c0, %c0_0] : memref<128x128xbf16, #tpu.memory_space<vmem>>, vector<128x128xbf16>
    %c0_1 = arith.constant 0 : index
    %c0_2 = arith.constant 0 : index
    %1 = vector.load %arg3[%c0_1, %c0_2] : memref<1x128xf32, #tpu.memory_space<vmem>>, vector<1x128xf32>
    %c0_3 = arith.constant 0 : index
    %c0_4 = arith.constant 0 : index
    %2 = vector.load %arg4[%c0_3, %c0_4] : memref<128x128xbf16, #tpu.memory_space<vmem>>, vector<128x128xbf16>
    %c0_5 = arith.constant 0 : index
    %c0_6 = arith.constant 0 : index
    %3 = vector.load %arg5[%c0_5, %c0_6] : memref<1x128xf32, #tpu.memory_space<vmem>>, vector<1x128xf32>
    %c0_7 = arith.constant 0 : index
    %c0_8 = arith.constant 0 : index
    %4 = vector.load %arg1[%c0_7, %c0_8] : memref<8x1024xbf16, #tpu.memory_space<vmem>>, vector<8x128xbf16>
    %cst = arith.constant dense<0.000000e+00> : vector<8x128xf32>
    %5 = tpu.matmul %4, %0, %cst {dimension_numbers = #tpu.dot_dimension_numbers<[1], [0], [0], [1], [0, 0, 1, 1], [], []>} : vector<8x128xbf16>, vector<128x128xbf16>, vector<8x128xf32> -> vector<8x128xf32>
    %6 = vector.broadcast %1 : vector<1x128xf32> to vector<8x128xf32>
    %7 = arith.addf %5, %6 : vector<8x128xf32>
    %cst_9 = arith.constant 0.000000e+00 : f32
    %8 = vector.broadcast %cst_9 : f32 to vector<8x128xf32>
    %9 = arith.maximumf %7, %8 : vector<8x128xf32>
    %10 = arith.truncf %9 : vector<8x128xf32> to vector<8x128xbf16>
    %cst_10 = arith.constant dense<0.000000e+00> : vector<8x128xf32>
    %11 = tpu.matmul %10, %2, %cst_10 {dimension_numbers = #tpu.dot_dimension_numbers<[1], [0], [0], [1], [0, 0, 1, 1], [], []>} : vector<8x128xbf16>, vector<128x128xbf16>, vector<8x128xf32> -> vector<8x128xf32>
    %12 = vector.broadcast %3 : vector<1x128xf32> to vector<8x128xf32>
    %13 = arith.addf %11, %12 : vector<8x128xf32>
    %cst_11 = arith.constant 0.000000e+00 : f32
    %14 = vector.broadcast %cst_11 : f32 to vector<8x128xf32>
    %15 = arith.maximumf %13, %14 : vector<8x128xf32>
    %c0_12 = arith.constant 0 : index
    %c128 = arith.constant 128 : index
    %16 = vector.load %arg1[%c0_12, %c128] : memref<8x1024xbf16, #tpu.memory_space<vmem>>, vector<8x128xbf16>
    %cst_13 = arith.constant dense<0.000000e+00> : vector<8x128xf32>
    %17 = tpu.matmul %16, %0, %cst_13 {dimension_numbers = #tpu.dot_dimension_numbers<[1], [0], [0], [1], [0, 0, 1, 1], [], []>} : vector<8x128xbf16>, vector<128x128xbf16>, vector<8x128xf32> -> vector<8x128xf32>
    %18 = vector.broadcast %1 : vector<1x128xf32> to vector<8x128xf32>
    %19 = arith.addf %17, %18 : vector<8x128xf32>
    %cst_14 = arith.constant 0.000000e+00 : f32
    %20 = vector.broadcast %cst_14 : f32 to vector<8x128xf32>
    %21 = arith.maximumf %19, %20 : vector<8x128xf32>
    %22 = arith.truncf %21 : vector<8x128xf32> to vector<8x128xbf16>
    %cst_15 = arith.constant dense<0.000000e+00> : vector<8x128xf32>
    %23 = tpu.matmul %22, %2, %cst_15 {dimension_numbers = #tpu.dot_dimension_numbers<[1], [0], [0], [1], [0, 0, 1, 1], [], []>} : vector<8x128xbf16>, vector<128x128xbf16>, vector<8x128xf32> -> vector<8x128xf32>
    %24 = vector.broadcast %3 : vector<1x128xf32> to vector<8x128xf32>
    %25 = arith.addf %23, %24 : vector<8x128xf32>
    %cst_16 = arith.constant 0.000000e+00 : f32
    %26 = vector.broadcast %cst_16 : f32 to vector<8x128xf32>
    %27 = arith.maximumf %25, %26 : vector<8x128xf32>
    %28 = arith.maximumf %15, %27 : vector<8x128xf32>
    %c0_17 = arith.constant 0 : index
    %c256 = arith.constant 256 : index
    %29 = vector.load %arg1[%c0_17, %c256] : memref<8x1024xbf16, #tpu.memory_space<vmem>>, vector<8x128xbf16>
    %cst_18 = arith.constant dense<0.000000e+00> : vector<8x128xf32>
    %30 = tpu.matmul %29, %0, %cst_18 {dimension_numbers = #tpu.dot_dimension_numbers<[1], [0], [0], [1], [0, 0, 1, 1], [], []>} : vector<8x128xbf16>, vector<128x128xbf16>, vector<8x128xf32> -> vector<8x128xf32>
    %31 = vector.broadcast %1 : vector<1x128xf32> to vector<8x128xf32>
    %32 = arith.addf %30, %31 : vector<8x128xf32>
    %cst_19 = arith.constant 0.000000e+00 : f32
    %33 = vector.broadcast %cst_19 : f32 to vector<8x128xf32>
    %34 = arith.maximumf %32, %33 : vector<8x128xf32>
    %35 = arith.truncf %34 : vector<8x128xf32> to vector<8x128xbf16>
    %cst_20 = arith.constant dense<0.000000e+00> : vector<8x128xf32>
    %36 = tpu.matmul %35, %2, %cst_20 {dimension_numbers = #tpu.dot_dimension_numbers<[1], [0], [0], [1], [0, 0, 1, 1], [], []>} : vector<8x128xbf16>, vector<128x128xbf16>, vector<8x128xf32> -> vector<8x128xf32>
    %37 = vector.broadcast %3 : vector<1x128xf32> to vector<8x128xf32>
    %38 = arith.addf %36, %37 : vector<8x128xf32>
    %cst_21 = arith.constant 0.000000e+00 : f32
    %39 = vector.broadcast %cst_21 : f32 to vector<8x128xf32>
    %40 = arith.maximumf %38, %39 : vector<8x128xf32>
    %41 = arith.maximumf %28, %40 : vector<8x128xf32>
    %c0_22 = arith.constant 0 : index
    %c384 = arith.constant 384 : index
    %42 = vector.load %arg1[%c0_22, %c384] : memref<8x1024xbf16, #tpu.memory_space<vmem>>, vector<8x128xbf16>
    %cst_23 = arith.constant dense<0.000000e+00> : vector<8x128xf32>
    %43 = tpu.matmul %42, %0, %cst_23 {dimension_numbers = #tpu.dot_dimension_numbers<[1], [0], [0], [1], [0, 0, 1, 1], [], []>} : vector<8x128xbf16>, vector<128x128xbf16>, vector<8x128xf32> -> vector<8x128xf32>
    %44 = vector.broadcast %1 : vector<1x128xf32> to vector<8x128xf32>
    %45 = arith.addf %43, %44 : vector<8x128xf32>
    %cst_24 = arith.constant 0.000000e+00 : f32
    %46 = vector.broadcast %cst_24 : f32 to vector<8x128xf32>
    %47 = arith.maximumf %45, %46 : vector<8x128xf32>
    %48 = arith.truncf %47 : vector<8x128xf32> to vector<8x128xbf16>
    %cst_25 = arith.constant dense<0.000000e+00> : vector<8x128xf32>
    %49 = tpu.matmul %48, %2, %cst_25 {dimension_numbers = #tpu.dot_dimension_numbers<[1], [0], [0], [1], [0, 0, 1, 1], [], []>} : vector<8x128xbf16>, vector<128x128xbf16>, vector<8x128xf32> -> vector<8x128xf32>
    %50 = vector.broadcast %3 : vector<1x128xf32> to vector<8x128xf32>
    %51 = arith.addf %49, %50 : vector<8x128xf32>
    %cst_26 = arith.constant 0.000000e+00 : f32
    %52 = vector.broadcast %cst_26 : f32 to vector<8x128xf32>
    %53 = arith.maximumf %51, %52 : vector<8x128xf32>
    %54 = arith.maximumf %41, %53 : vector<8x128xf32>
    %c0_27 = arith.constant 0 : index
    %c512 = arith.constant 512 : index
    %55 = vector.load %arg1[%c0_27, %c512] : memref<8x1024xbf16, #tpu.memory_space<vmem>>, vector<8x128xbf16>
    %cst_28 = arith.constant dense<0.000000e+00> : vector<8x128xf32>
    %56 = tpu.matmul %55, %0, %cst_28 {dimension_numbers = #tpu.dot_dimension_numbers<[1], [0], [0], [1], [0, 0, 1, 1], [], []>} : vector<8x128xbf16>, vector<128x128xbf16>, vector<8x128xf32> -> vector<8x128xf32>
    %57 = vector.broadcast %1 : vector<1x128xf32> to vector<8x128xf32>
    %58 = arith.addf %56, %57 : vector<8x128xf32>
    %cst_29 = arith.constant 0.000000e+00 : f32
    %59 = vector.broadcast %cst_29 : f32 to vector<8x128xf32>
    %60 = arith.maximumf %58, %59 : vector<8x128xf32>
    %61 = arith.truncf %60 : vector<8x128xf32> to vector<8x128xbf16>
    %cst_30 = arith.constant dense<0.000000e+00> : vector<8x128xf32>
    %62 = tpu.matmul %61, %2, %cst_30 {dimension_numbers = #tpu.dot_dimension_numbers<[1], [0], [0], [1], [0, 0, 1, 1], [], []>} : vector<8x128xbf16>, vector<128x128xbf16>, vector<8x128xf32> -> vector<8x128xf32>
    %63 = vector.broadcast %3 : vector<1x128xf32> to vector<8x128xf32>
    %64 = arith.addf %62, %63 : vector<8x128xf32>
    %cst_31 = arith.constant 0.000000e+00 : f32
    %65 = vector.broadcast %cst_31 : f32 to vector<8x128xf32>
    %66 = arith.maximumf %64, %65 : vector<8x128xf32>
    %67 = arith.maximumf %54, %66 : vector<8x128xf32>
    %c0_32 = arith.constant 0 : index
    %c640 = arith.constant 640 : index
    %68 = vector.load %arg1[%c0_32, %c640] : memref<8x1024xbf16, #tpu.memory_space<vmem>>, vector<8x128xbf16>
    %cst_33 = arith.constant dense<0.000000e+00> : vector<8x128xf32>
    %69 = tpu.matmul %68, %0, %cst_33 {dimension_numbers = #tpu.dot_dimension_numbers<[1], [0], [0], [1], [0, 0, 1, 1], [], []>} : vector<8x128xbf16>, vector<128x128xbf16>, vector<8x128xf32> -> vector<8x128xf32>
    %70 = vector.broadcast %1 : vector<1x128xf32> to vector<8x128xf32>
    %71 = arith.addf %69, %70 : vector<8x128xf32>
    %cst_34 = arith.constant 0.000000e+00 : f32
    %72 = vector.broadcast %cst_34 : f32 to vector<8x128xf32>
    %73 = arith.maximumf %71, %72 : vector<8x128xf32>
    %74 = arith.truncf %73 : vector<8x128xf32> to vector<8x128xbf16>
    %cst_35 = arith.constant dense<0.000000e+00> : vector<8x128xf32>
    %75 = tpu.matmul %74, %2, %cst_35 {dimension_numbers = #tpu.dot_dimension_numbers<[1], [0], [0], [1], [0, 0, 1, 1], [], []>} : vector<8x128xbf16>, vector<128x128xbf16>, vector<8x128xf32> -> vector<8x128xf32>
    %76 = vector.broadcast %3 : vector<1x128xf32> to vector<8x128xf32>
    %77 = arith.addf %75, %76 : vector<8x128xf32>
    %cst_36 = arith.constant 0.000000e+00 : f32
    %78 = vector.broadcast %cst_36 : f32 to vector<8x128xf32>
    %79 = arith.maximumf %77, %78 : vector<8x128xf32>
    %80 = arith.maximumf %67, %79 : vector<8x128xf32>
    %c0_37 = arith.constant 0 : index
    %c768 = arith.constant 768 : index
    %81 = vector.load %arg1[%c0_37, %c768] : memref<8x1024xbf16, #tpu.memory_space<vmem>>, vector<8x128xbf16>
    %cst_38 = arith.constant dense<0.000000e+00> : vector<8x128xf32>
    %82 = tpu.matmul %81, %0, %cst_38 {dimension_numbers = #tpu.dot_dimension_numbers<[1], [0], [0], [1], [0, 0, 1, 1], [], []>} : vector<8x128xbf16>, vector<128x128xbf16>, vector<8x128xf32> -> vector<8x128xf32>
    %83 = vector.broadcast %1 : vector<1x128xf32> to vector<8x128xf32>
    %84 = arith.addf %82, %83 : vector<8x128xf32>
    %cst_39 = arith.constant 0.000000e+00 : f32
    %85 = vector.broadcast %cst_39 : f32 to vector<8x128xf32>
    %86 = arith.maximumf %84, %85 : vector<8x128xf32>
    %87 = arith.truncf %86 : vector<8x128xf32> to vector<8x128xbf16>
    %cst_40 = arith.constant dense<0.000000e+00> : vector<8x128xf32>
    %88 = tpu.matmul %87, %2, %cst_40 {dimension_numbers = #tpu.dot_dimension_numbers<[1], [0], [0], [1], [0, 0, 1, 1], [], []>} : vector<8x128xbf16>, vector<128x128xbf16>, vector<8x128xf32> -> vector<8x128xf32>
    %89 = vector.broadcast %3 : vector<1x128xf32> to vector<8x128xf32>
    %90 = arith.addf %88, %89 : vector<8x128xf32>
    %cst_41 = arith.constant 0.000000e+00 : f32
    %91 = vector.broadcast %cst_41 : f32 to vector<8x128xf32>
    %92 = arith.maximumf %90, %91 : vector<8x128xf32>
    %93 = arith.maximumf %80, %92 : vector<8x128xf32>
    %c0_42 = arith.constant 0 : index
    %c896 = arith.constant 896 : index
    %94 = vector.load %arg1[%c0_42, %c896] : memref<8x1024xbf16, #tpu.memory_space<vmem>>, vector<8x128xbf16>
    %cst_43 = arith.constant dense<0.000000e+00> : vector<8x128xf32>
    %95 = tpu.matmul %94, %0, %cst_43 {dimension_numbers = #tpu.dot_dimension_numbers<[1], [0], [0], [1], [0, 0, 1, 1], [], []>} : vector<8x128xbf16>, vector<128x128xbf16>, vector<8x128xf32> -> vector<8x128xf32>
    %96 = vector.broadcast %1 : vector<1x128xf32> to vector<8x128xf32>
    %97 = arith.addf %95, %96 : vector<8x128xf32>
    %cst_44 = arith.constant 0.000000e+00 : f32
    %98 = vector.broadcast %cst_44 : f32 to vector<8x128xf32>
    %99 = arith.maximumf %97, %98 : vector<8x128xf32>
    %100 = arith.truncf %99 : vector<8x128xf32> to vector<8x128xbf16>
    %cst_45 = arith.constant dense<0.000000e+00> : vector<8x128xf32>
    %101 = tpu.matmul %100, %2, %cst_45 {dimension_numbers = #tpu.dot_dimension_numbers<[1], [0], [0], [1], [0, 0, 1, 1], [], []>} : vector<8x128xbf16>, vector<128x128xbf16>, vector<8x128xf32> -> vector<8x128xf32>
    %102 = vector.broadcast %3 : vector<1x128xf32> to vector<8x128xf32>
    %103 = arith.addf %101, %102 : vector<8x128xf32>
    %cst_46 = arith.constant 0.000000e+00 : f32
    %104 = vector.broadcast %cst_46 : f32 to vector<8x128xf32>
    %105 = arith.maximumf %103, %104 : vector<8x128xf32>
    %106 = arith.maximumf %93, %105 : vector<8x128xf32>
    %c0_47 = arith.constant 0 : index
    %c0_48 = arith.constant 0 : index
    %107 = vector.load %arg6[%c0_47, %c0_48] : memref<8x128xf32, #tpu.memory_space<vmem>>, vector<8x128xf32>
    tpu.vector_store %arg6[%c0_47, %c0_48], %106 {strides = array<i32>} : memref<8x128xf32, #tpu.memory_space<vmem>>, vector<8x128xf32>,
    return
  }
  func.func @transform_0(%arg0: i32) -> (i32, i32) {
    %c0_i32 = arith.constant 0 : i32
    %c0_i32_0 = arith.constant 0 : i32
    return %arg0, %c0_i32 : i32, i32
  }
  func.func @transform_1(%arg0: i32) -> (i32, i32) {
    %c0_i32 = arith.constant 0 : i32
    %c0_i32_0 = arith.constant 0 : i32
    %c0_i32_1 = arith.constant 0 : i32
    return %c0_i32, %c0_i32_0 : i32, i32
  }
  func.func @transform_2(%arg0: i32) -> (i32, i32) {
    %c0_i32 = arith.constant 0 : i32
    %c0_i32_0 = arith.constant 0 : i32
    %c0_i32_1 = arith.constant 0 : i32
    return %c0_i32, %c0_i32_0 : i32, i32
  }
  func.func @transform_3(%arg0: i32) -> (i32, i32) {
    %c0_i32 = arith.constant 0 : i32
    %c0_i32_0 = arith.constant 0 : i32
    %c0_i32_1 = arith.constant 0 : i32
    return %c0_i32, %c0_i32_0 : i32, i32
  }
  func.func @transform_4(%arg0: i32) -> (i32, i32) {
    %c0_i32 = arith.constant 0 : i32
    %c0_i32_0 = arith.constant 0 : i32
    %c0_i32_1 = arith.constant 0 : i32
    return %c0_i32, %c0_i32_0 : i32, i32
  }
  func.func @transform_5(%arg0: i32) -> (i32, i32) {
    %c0_i32 = arith.constant 0 : i32
    %c0_i32_0 = arith.constant 0 : i32
    return %arg0, %c0_i32 : i32, i32
  }
}

</mosaic_0001>

<bundles_post_ra>
// kernel: tpu_custom_call.1
= control target key start
LH: loop header
LB: loop body
LE: loop exit
PB: predicated region body
PF: predicated region fallthrough
CT: control target
= control target key end

     0   :  { %10 = vsyncpa [#allocation3], 0  ;;  %s2555_s0 = inlined_call_operand.hbm [shape: bf16[16,1024], index: 0, kind: input, shape index: {}]   ;;  %s2556_s1 = inlined_call_operand.hbm [shape: bf16[128,128], index: 1, kind: input, shape index: {}]   ;;  %s2557_s2 = inlined_call_operand.vmem [shape: f32[1,128], index: 2, kind: input, shape index: {}]   ;;  %s2558_s3 = inlined_call_operand.hbm [shape: bf16[128,128], index: 3, kind: input, shape index: {}]   ;;  %s2559_s4 = inlined_call_operand.vmem [shape: f32[1,128], index: 4, kind: input, shape index: {}]   ;;  %s2560_s5 = inlined_call_operand.hbm [shape: f32[16,128], index: 5, kind: output, shape index: {}]  }
   0x1   :  { %12 = vsyncpa [#allocation3 + $0x1], 0 }
   0x2   :  { %13 = vsyncpa [#allocation6], 0 }
   0x3   :  { %14 = vsyncpa [#allocation4], 0 }
   0x4   :  { %16 = vsyncpa [#allocation4 + $0x1], 0  ;;  %s1979_s18 = smov 0   ;;  %s1981_s19 = smov 0  }
   0x5   :  { %s1983_s20 = smov 0   ;;  %s1985_s21 = smov 0  }
   0x6 LB: > { %s2000_s22 = sadd.s32 4294967295, %s1939_s21   ;;  %s1196_s23 = sadd.s32 4294967294, %s1939_s21   ;;  %s1939_s21 = sphi %s1985_s21, %s2580_s21   ;;  %s1935_s20 = sphi %s1983_s20, %s2579_s20   ;;  %s1931_s19 = sphi %s1981_s19, %s2578_s19   ;;  %s1927_s18 = sphi %s1979_s18, %s2577_s18  }
   0x7   : > { %p42_p0 = scmp.ne.s32.totalorder %s1931_s19, %s1927_s18  ;;  %p2561_p1 = scmp.eq.s32.totalorder %s2000_s22, 0 }
   0x8   : > { %p156_p3 = scmp.eq.s32.totalorder %s1196_s23, 1  ;;  %p1197_p5 = scmp.ge.s32.totalorder %s1939_s21, 1 }
   0x9   : > { %p2009_p4 = por %p2561_p1, %p42_p0  ;;  %p163_p7 = scmp.lt.s32.totalorder %s1939_s21, 3 }
   0xa   : > { %p2014_p6 = por %p156_p3, %p42_p0  ;;  %s1941_s27 = smov [#allocation5]  }
   0xb   : > { %s2564_s24 = scalar_select %p2009_p4, 1, 0 }
   0xc   : > { %s2565_s25 = scalar_select %p2014_p6, 1, 0 }
   0xd   : > { %p2019_p8 = pnand %p1197_p5, %p163_p7  ;;  %s175_s28 = sshll.u32 %s1941_s27, 4  ;;  %s2023_s28 = int_to_ptr.vmem [resolvable:$true] %s175_s28 }
   0xe   : > { %s1942_s30 = smov [#allocation7]   ;;  %s1783_s9 = scalar_lea.hbm %s2556_s1, 1024 }
   0xf   : > { %p1708_p9 = pneg %p2019_p8  ;;  %s191_s6 = sshll.u32 %s1942_s30, 4  ;;  %s2034_s6 = int_to_ptr.vmem [resolvable:$true] %s191_s6 }
  0x10   : > { %p1784_p12 = scmp.ne.s32.totalorder %s2556_s1, %s1783_s9  ;;  %p1790_p5 = scmp.lt.u32.totalorder %s1783_s9, %s2556_s1 }
  0x11   : > { %p2030_p11 = pnand %p1708_p9, %p2561_p1 }
  0x13   : > { %p1785_p13 = pneg %p2030_p11 }
  0x15   : > { %p1786_p0 = pnand %p1785_p13, %p1784_p12 }
  0x17   : > { %p1787_p3 = pneg %p1786_p0 }
  0x19   : > { %p1792_p7 = pnand %p1790_p5, %p1787_p3 }
  0x1b   : > { %1795 = shalt.err (!%p1792_p7)
}
  0x1c   : > { %s1796_s14 = scalar_lea.vmem %s2023_s28, 1024  ;;  %p1804_p2 = scmp.lt.s32.totalorder %s2023_s28, %s2023_s28 }
  0x1d   : > { %p1797_p9 = scmp.ne.s32.totalorder %s2023_s28, %s1796_s14  ;;  %p1805_p12 = scmp.lt.s32.totalorder %s1796_s14, %s1796_s14 }
  0x1f   : > { %p1799_p10 = pnand %p1797_p9, %p1785_p13  ;;  %p1806_p0 = por %p1805_p12, %p1804_p2 }
  0x21   : > { %p1800_p1 = pneg %p1799_p10 }
  0x23   : > { %p1807_p6 = pnand %p1806_p0, %p1800_p1 }
  0x25   : > { %1810 = shalt.err (!%p1807_p6)
}
  0x26   : > { %s1943_s15 = smov 64   ;;  %s1944_s16 = smov 4  }
  0x27   : > { %1711 = dma.hbm_to_vmem [thread:$0]  (!%p2030_p11), %s2556_s1, 1024, %s2023_s28, [#allocation6], %s1943_s15, %s1943_s15, %s1944_s16  }
  0x28   : > { %s1811_s7 = scalar_lea.hbm %s2558_s3, 1024 }
  0x29   : > { %p1812_p2 = scmp.ne.s32.totalorder %s2558_s3, %s1811_s7  ;;  %p1818_p10 = scmp.lt.u32.totalorder %s1811_s7, %s2558_s3 }
  0x2b   : > { %p1814_p1 = pnand %p1812_p2, %p1785_p13 }
  0x2d   : > { %p1815_p6 = pneg %p1814_p1 }
  0x2f   : > { %p1820_p3 = pnand %p1818_p10, %p1815_p6 }
  0x31   : > { %1823 = shalt.err (!%p1820_p3)
}
  0x32   : > { %s1824_s28 = scalar_lea.vmem %s2034_s6, 1024  ;;  %p1832_p12 = scmp.lt.s32.totalorder %s2034_s6, %s2034_s6 }
  0x33   : > { %p1825_p5 = scmp.ne.s32.totalorder %s2034_s6, %s1824_s28  ;;  %p1833_p0 = scmp.lt.s32.totalorder %s1824_s28, %s1824_s28 }
  0x35   : > { %p1827_p7 = pnand %p1825_p5, %p1785_p13  ;;  %p1834_p2 = por %p1833_p0, %p1832_p12 }
  0x37   : > { %p1828_p9 = pneg %p1827_p7 }
  0x39   : > { %p1835_p1 = pnand %p1834_p2, %p1828_p9 }
  0x3b   : > { %1838 = shalt.err (!%p1835_p1)
}
  0x3c   : > { %1714 = dma.hbm_to_vmem [thread:$0]  (!%p2030_p11), %s2558_s3, 1024, %s2034_s6, [#allocation6], %s1943_s15, %s1943_s15, %s1944_s16  }
  0x3d   : > { %s2089_s14 = sadd.s32 1, %s1939_s21   ;;  %s29_s29 = sadd.s32 1, %s1935_s20 }
  0x3e   : > { %s26_s17 = ssub.s32 %s1939_s21, %s2089_s14  ;;  %p36_p13 = scmp.ne.s32.totalorder %s1935_s20, %s1931_s19 }
  0x3f   : > { %p27_p6 = scmp.eq.s32.totalorder %s26_s17, 0  ;;  %p37_p10 = scmp.eq.s32.totalorder %s1939_s21, 0 }
  0x40   : > { %p2568_p3 = scmp.eq.s32.totalorder %s2000_s22, 1  ;;  %p1725_p7 = scmp.lt.s32.totalorder %s1939_s21, 2 }
  0x41   : > { %s2105_s27 = scalar_select %p27_p6, %s1935_s20, %s29_s29  }
  0x42   : > { %p2099_p5 = por %p2568_p3, %p36_p13  ;;  %p38_p9 = por %p37_p10, %p36_p13 }
  0x43   : > { %s208_s30 = sand.u32 1, %s1935_s20   ;;  %s1231_s6 = sshll.u32 %s1939_s21, 9 }
  0x44   : > { %s2569_s23 = scalar_select %p2099_p5, 1, 0 }
  0x45   : > { %s1201_s7 = sshll.u32 %s208_s30, 5  ;;  %s2112_s8 = scalar_lea.hbm %s2555_s0, %s1231_s6 }
  0x46   : > { %s212_s9 = scalar_lea.vmem [#allocation2], %s1201_s7  ;;  %p2116_p11 = pnand %p1725_p7, %p38_p9 }
  0x47   : > { %s220_s10 = sshll.u32 %s212_s9, 4  ;;  %s209_s28 = scalar_lea.sflag [#allocation3], %s208_s30  ;;  %s2114_s10 = int_to_ptr.vmem [resolvable:$true] %s220_s10 }
  0x48   : > { %s1839_s12 = scalar_lea.hbm %s2112_s8, 512  ;;  %p1841_p0 = pneg %p2116_p11 }
  0x49   : > { %p1840_p12 = scmp.ne.s32.totalorder %s2112_s8, %s1839_s12  ;;  %s1844_s17 = scalar_lea.hbm %s2555_s0, 1024 }
  0x4a   : > { %p1845_p13 = scmp.lt.u32.totalorder %s2112_s8, %s2555_s0  ;;  %p1846_p6 = scmp.lt.u32.totalorder %s1844_s17, %s1839_s12 }
  0x4b   : > { %p1842_p2 = pnand %p1841_p0, %p1840_p12  ;;  %p1848_p3 = scmp.lt.u32.totalorder %s1839_s12, %s2112_s8 }
  0x4c   : > { %p1847_p10 = por %p1846_p6, %p1845_p13 }
  0x4d   : > { %p1843_p1 = pneg %p1842_p2 }
  0x4e   : > { %p1849_p7 = por %p1848_p3, %p1847_p10 }
  0x50   : > { %p1850_p9 = pnand %p1849_p7, %p1843_p1 }
  0x52   : > { %1853 = shalt.err (!%p1850_p9)
}
  0x53   : > { %s1854_s30 = scalar_lea.vmem %s2114_s10, 512  ;;  %s1945_s15 = smov [#allocation2]  }
  0x54   : > { %p1855_p12 = scmp.ne.s32.totalorder %s2114_s10, %s1854_s30  ;;  %s1859_s16 = sshll.u32 %s1945_s15, 4  ;;  %s1860_s16 = int_to_ptr.vmem [resolvable:$false] %s1859_s16 }
  0x55   : > { %s1861_s9 = scalar_lea.vmem %s1860_s16, 1024  ;;  %p1862_p4 = scmp.lt.s32.totalorder %s2114_s10, %s1860_s16 }
  0x56   : > { %p1857_p2 = pnand %p1855_p12, %p1841_p0  ;;  %p1863_p13 = scmp.lt.s32.totalorder %s1861_s9, %s1854_s30 }
  0x58   : > { %p1858_p5 = pneg %p1857_p2  ;;  %p1864_p6 = por %p1863_p13, %p1862_p4 }
  0x5a   : > { %p1865_p10 = pnand %p1864_p6, %p1858_p5 }
  0x5c   : > { %1868 = shalt.err (!%p1865_p10)
}
  0x5d   : > { %1718 = dma.hbm_to_vmem [thread:$0]  (!%p2116_p11), %s2112_s8, 512, %s2114_s10, %s209_s28  }
  0x5e   : > { %229 = sbr.rel (%p2019_p8) target bundleno = 813 (0x32d), region = 40  ;;  %s2148_s12 = sand.u32 (!%p2019_p8), 1, %s1931_s19  }
  0x5f   : > { %s1205_s13 = sshll.u32 (!%p2019_p8), %s2148_s12, 5  ;;  %s232_s29 = scalar_lea.sflag (!%p2019_p8), [#allocation3], %s2148_s12 }
  0x60   : > { %s2152_s17 = scalar_lea.vmem (!%p2019_p8), [#allocation2], %s1205_s13  ;;  %p2571_p4 = scmp.ne.s32.totalorder (!%p2019_p8), %s2564_s24, 0 }
  0x65   : > { %1914 = dma.done.wait (%p2571_p4), %s232_s29, 512  }
  0x66   : > { %1916 = vsyncadd (%p2571_p4), %s232_s29, 4294966784  ;;  %p2572_p5 = scmp.eq.s32.totalorder %s2000_s22, 0 }
  0x68   : > { %1918 = dma.done.wait (%p2572_p5), [#allocation6], 2048   ;;  %p2573_p8 = pmov %p2572_p5 }
  0x69   : > { %v1946_v0 = vmov 0.0   ;;  %vm1947_vm0 = vmmov 0   ;;  %v2168_v1 = vld [vmem:[#allocation5] sm:$0xff]   ;;  %v2171_v2 = vld [vmem:[#allocation5 + $0x8] sm:$0xff]   ;;  %v2175_v3 = vld [vmem:[#allocation5 + $0x10] sm:$0xff]   ;;  %s1208_s11 = sshll.u32 %s2148_s12, 3 }
  0x6a   : > { %1920 = vsyncadd (%p2573_p8), [#allocation6], 4294965248  ;;  %1376 = vmatprep.subr.bf16.mxu0 %v1946_v0  ;;  %1392 = vmatprep.mubr.msk.bf16.mxu0 %vm1947_vm0, %v1946_v0  ;;  %v2178_v4 = vld [vmem:[#allocation5 + $0x18] sm:$0xff]   ;;  %v2183_v5 = vld [vmem:[#allocation5 + $0x20] sm:$0xff]   ;;  %s1228_s28 = sshll.u32 %s2000_s22, 7  ;;  %s269_s7 = scalar_lea.vmem [#allocation8], %s1208_s11 }
  0x6b   : > { %1396 = vmatprep.subr.bf16.mxu1 %v1946_v0  ;;  %1412 = vmatprep.mubr.msk.bf16.mxu1 %vm1947_vm0, %v1946_v0  ;;  %v2187_v6 = vld [vmem:[#allocation5 + $0x28] sm:$0xff]   ;;  %v2191_v7 = vld [vmem:[#allocation5 + $0x30] sm:$0xff]   ;;  %v2195_v8 = vld [vmem:[#allocation5 + $0x38] sm:$0xff]   ;;  %s1107_s6 = sshll.u32 %s269_s7, 4  ;;  %s2511_s16 = scalar_lea.hbm %s2560_s5, %s1228_s28  ;;  %s2513_s6 = int_to_ptr.vmem [resolvable:$true] %s1107_s6 }
  0x6c   : > { %1377 = vmatpush3.bf16.msra.mxu0 %v2168_v1  ;;  %v305_v9 = vld [vmem:[%s2152_s17] sm:$0xf]  ;;  %v497_v10 = vld [vmem:[%s2152_s17 + $0x4] sm:$0xf]  ;;  %v582_v12 = vld [vmem:[%s2152_s17 + $0x8] sm:$0xf] }
  0x6d   : > { %1378 = vmatprep.subr.bf16.mxu0 %v1946_v0  ;;  %v2235_v11 = vld [vmem:[#allocation7] sm:$0xff]   ;;  %v2242_v13 = vld [vmem:[#allocation7 + $0x8] sm:$0xff]   ;;  %v2250_v14 = vld [vmem:[#allocation7 + $0x10] sm:$0xff]   ;;  %s1094_s9 = scalar_lea.sflag [#allocation4], %s2148_s12  ;;  %s1869_s13 = scalar_lea.vmem %s2513_s6, 128 }
  0x6e   : > { %1397 = vmatpush3.bf16.msra.mxu1 %v2235_v11  ;;  %v2256_v15 = vld [vmem:[#allocation7 + $0x18] sm:$0xff]   ;;  %v2262_v16 = vld [vmem:[#allocation7 + $0x20] sm:$0xff]   ;;  %v2268_v17 = vld [vmem:[#allocation7 + $0x28] sm:$0xff]   ;;  %p1870_p11 = scmp.ne.s32.totalorder %s2513_s6, %s1869_s13  ;;  %p2574_p0 = scmp.ne.s32.totalorder %s2569_s23, 0 }
  0x6f   : > { %1398 = vmatprep.subr.bf16.mxu1 %v1946_v0  ;;  %v2274_v18 = vld [vmem:[#allocation7 + $0x30] sm:$0xff]   ;;  %v2280_v19 = vld [vmem:[#allocation7 + $0x38] sm:$0xff]   ;;  %v667_v20 = vld [vmem:[%s2152_s17 + $0xc] sm:$0xf]  ;;  %s1948_s22 = smov [#allocation8]  }
  0x70   : > { %1379 = vmatpush3.bf16.msra.mxu0 %v2171_v2  ;;  %v752_v21 = vld [vmem:[%s2152_s17 + $0x10] sm:$0xf]  ;;  %v837_v22 = vld [vmem:[%s2152_s17 + $0x14] sm:$0xf]  ;;  %v922_v23 = vld [vmem:[%s2152_s17 + $0x18] sm:$0xf]  ;;  %p1871_p1 = pnand %p1870_p11, %p2574_p0 }
  0x71   : > { %1380 = vmatprep.subr.bf16.mxu0 %v1946_v0  ;;  %v2361_v24 = vld [vmem:[%s2557_s2] ss:$0 sm:$0xff]  ;;  %v1007_v32 = vld [vmem:[%s2152_s17 + $0x1c] sm:$0xf]  ;;  %s1873_s29 = sshll.u32 %s1948_s22, 4  ;;  %s1874_s29 = int_to_ptr.vmem [resolvable:$false] %s1873_s29 }
  0x72   : > { %1399 = vmatpush3.bf16.msra.mxu1 %v2242_v13  ;;  %p1872_p3 = pneg %p1871_p1  ;;  %s1875_s17 = scalar_lea.vmem %s1874_s29, 256 }
  0x73   : > { %1400 = vmatprep.subr.bf16.mxu1 %v1946_v0  ;;  %p1876_p7 = scmp.lt.s32.totalorder %s2513_s6, %s1874_s29  ;;  %p1877_p9 = scmp.lt.s32.totalorder %s1875_s17, %s1869_s13 }
  0x74   : > { %1381 = vmatpush3.bf16.msra.mxu0 %v2175_v3 }
  0x75   : > { %1382 = vmatprep.subr.bf16.mxu0 %v1946_v0  ;;  %p1878_p12 = por %p1877_p9, %p1876_p7 }
  0x76   : > { %1401 = vmatpush3.bf16.msra.mxu1 %v2250_v14 }
  0x77   : > { %1402 = vmatprep.subr.bf16.mxu1 %v1946_v0  ;;  %p1879_p2 = pnand %p1878_p12, %p1872_p3 }
  0x78   : > { %1383 = vmatpush3.bf16.msra.mxu0 %v2178_v4 }
  0x79   : > { %1384 = vmatprep.subr.bf16.mxu0 %v1946_v0 }
  0x7a   : > { %1403 = vmatpush3.bf16.msra.mxu1 %v2256_v15 }
  0x7b   : > { %1404 = vmatprep.subr.bf16.mxu1 %v1946_v0 }
  0x7c   : > { %1385 = vmatpush3.bf16.msra.mxu0 %v2183_v5 }
  0x7d   : > { %1386 = vmatprep.subr.bf16.mxu0 %v1946_v0 }
  0x7e   : > { %1405 = vmatpush3.bf16.msra.mxu1 %v2262_v16 }
  0x7f   : > { %1406 = vmatprep.subr.bf16.mxu1 %v1946_v0 }
  0x80   : > { %1387 = vmatpush3.bf16.msra.mxu0 %v2187_v6 }
  0x81   : > { %1388 = vmatprep.subr.bf16.mxu0 %v1946_v0 }
  0x82   : > { %1407 = vmatpush3.bf16.msra.mxu1 %v2268_v17 }
  0x83   : > { %1408 = vmatprep.subr.bf16.mxu1 %v1946_v0 }
  0x84   : > { %1389 = vmatpush3.bf16.msra.mxu0 %v2191_v7 }
  0x85   : > { %1390 = vmatprep.subr.bf16.mxu0 %v1946_v0 }
  0x86   : > { %1409 = vmatpush3.bf16.msra.mxu1 %v2274_v18 }
  0x87   : > { %1410 = vmatprep.subr.bf16.mxu1 %v1946_v0 }
  0x88   : > { %1391 = vmatpush3.bf16.msra.mxu0 %v2195_v8 }
  0x89   : > { %1416 = vmatprep.subr.bf16.mxu0 %v1946_v0 }
  0x8a   : > { %1411 = vmatpush3.bf16.msra.mxu1 %v2280_v19 }
  0x8b   : > { %1393 = vmatmul.mubr.bf16.vlgmr.msra.gmra.mrb[0].mxu0 %v305_v9  ;;  %1436 = vmatprep.subr.bf16.mxu1 %v1946_v0 }
  0x8c   : > { %1417 = vmatpush3.bf16.msra.mxu0 %v2168_v1  ;;  %1432 = vmatprep.mubr.msk.bf16.mxu0 %vm1947_vm0, %v1946_v0 }
  0x8d   : > { %1418 = vmatprep.subr.bf16.mxu0 %v1946_v0 }
  0x90   : > { %1419 = vmatpush3.bf16.msra.mxu0 %v2171_v2 }
  0x91   : > { %1420 = vmatprep.subr.bf16.mxu0 %v1946_v0 }
  0x94   : > { %1421 = vmatpush3.bf16.msra.mxu0 %v2175_v3 }
  0x95   : > { %1422 = vmatprep.subr.bf16.mxu0 %v1946_v0 }
  0x98   : > { %1423 = vmatpush3.bf16.msra.mxu0 %v2178_v4 }
  0x99   : > { %1424 = vmatprep.subr.bf16.mxu0 %v1946_v0 }
  0x9c   : > { %1425 = vmatpush3.bf16.msra.mxu0 %v2183_v5 }
  0x9d   : > { %1426 = vmatprep.subr.bf16.mxu0 %v1946_v0 }
  0xa0   : > { %1427 = vmatpush3.bf16.msra.mxu0 %v2187_v6 }
  0xa1   : > { %1428 = vmatprep.subr.bf16.mxu0 %v1946_v0 }
  0xa4   : > { %1429 = vmatpush3.bf16.msra.mxu0 %v2191_v7 }
  0xa5   : > { %1430 = vmatprep.subr.bf16.mxu0 %v1946_v0 }
  0xa8   : > { %1431 = vmatpush3.bf16.msra.mxu0 %v2195_v8 }
  0xa9   : > { %1456 = vmatprep.subr.bf16.mxu0 %v1946_v0 }
  0xab   : > { %1433 = vmatmul.mubr.bf16.vlgmr.msra.gmra.mrb[4].mxu0 %v497_v10 }
  0xac   : > { %1457 = vmatpush3.bf16.msra.mxu0 %v2168_v1  ;;  %1472 = vmatprep.mubr.msk.bf16.mxu0 %vm1947_vm0, %v1946_v0 }
  0xad   : > { %1458 = vmatprep.subr.bf16.mxu0 %v1946_v0 }
  0xb0   : > { %1459 = vmatpush3.bf16.msra.mxu0 %v2171_v2 }
  0xb1   : > { %1460 = vmatprep.subr.bf16.mxu0 %v1946_v0 }
  0xb4   : > { %1461 = vmatpush3.bf16.msra.mxu0 %v2175_v3 }
  0xb5   : > { %1462 = vmatprep.subr.bf16.mxu0 %v1946_v0 }
  0xb8   : > { %1463 = vmatpush3.bf16.msra.mxu0 %v2178_v4 }
  0xb9   : > { %1464 = vmatprep.subr.bf16.mxu0 %v1946_v0 }
  0xbc   : > { %1465 = vmatpush3.bf16.msra.mxu0 %v2183_v5 }
  0xbd   : > { %1466 = vmatprep.subr.bf16.mxu0 %v1946_v0 }
  0xc0   : > { %1467 = vmatpush3.bf16.msra.mxu0 %v2187_v6 }
  0xc1   : > { %1468 = vmatprep.subr.bf16.mxu0 %v1946_v0 }
  0xc4   : > { %1469 = vmatpush3.bf16.msra.mxu0 %v2191_v7 }
  0xc5   : > { %1470 = vmatprep.subr.bf16.mxu0 %v1946_v0 }
  0xc8   : > { %1471 = vmatpush3.bf16.msra.mxu0 %v2195_v8 }
  0xc9   : > { %1496 = vmatprep.subr.bf16.mxu0 %v1946_v0 }
  0xcb   : > { %1473 = vmatmul.mubr.bf16.vlgmr.msra.gmra.mrb[8].mxu0 %v582_v12 }
  0xcc   : > { %1497 = vmatpush3.bf16.msra.mxu0 %v2168_v1  ;;  %1512 = vmatprep.mubr.msk.bf16.mxu0 %vm1947_vm0, %v1946_v0 }
  0xcd   : > { %1498 = vmatprep.subr.bf16.mxu0 %v1946_v0 }
  0xd0   : > { %1499 = vmatpush3.bf16.msra.mxu0 %v2171_v2 }
  0xd1   : > { %1500 = vmatprep.subr.bf16.mxu0 %v1946_v0 }
  0xd4   : > { %1501 = vmatpush3.bf16.msra.mxu0 %v2175_v3 }
  0xd5   : > { %1502 = vmatprep.subr.bf16.mxu0 %v1946_v0 }
  0xd8   : > { %1503 = vmatpush3.bf16.msra.mxu0 %v2178_v4 }
  0xd9   : > { %1504 = vmatprep.subr.bf16.mxu0 %v1946_v0 }
  0xdc   : > { %1505 = vmatpush3.bf16.msra.mxu0 %v2183_v5 }
  0xdd   : > { %1506 = vmatprep.subr.bf16.mxu0 %v1946_v0 }
  0xe0   : > { %1507 = vmatpush3.bf16.msra.mxu0 %v2187_v6 }
  0xe1   : > { %1508 = vmatprep.subr.bf16.mxu0 %v1946_v0 }
  0xe4   : > { %1509 = vmatpush3.bf16.msra.mxu0 %v2191_v7 }
  0xe5   : > { %1510 = vmatprep.subr.bf16.mxu0 %v1946_v0 }
  0xe8   : > { %1511 = vmatpush3.bf16.msra.mxu0 %v2195_v8 }
  0xe9   : > { %1536 = vmatprep.subr.bf16.mxu0 %v1946_v0 }
  0xeb   : > { %1513 = vmatmul.mubr.bf16.vlgmr.msra.gmra.mrb[12].mxu0 %v667_v20 }
  0xec   : > { %1537 = vmatpush3.bf16.msra.mxu0 %v2168_v1  ;;  %1552 = vmatprep.mubr.msk.bf16.mxu0 %vm1947_vm0, %v1946_v0 }
  0xed   : > { %1538 = vmatprep.subr.bf16.mxu0 %v1946_v0 }
  0xf0   : > { %1539 = vmatpush3.bf16.msra.mxu0 %v2171_v2 }
  0xf1   : > { %1540 = vmatprep.subr.bf16.mxu0 %v1946_v0 }
  0xf4   : > { %1541 = vmatpush3.bf16.msra.mxu0 %v2175_v3 }
  0xf5   : > { %1542 = vmatprep.subr.bf16.mxu0 %v1946_v0 }
  0xf8   : > { %1543 = vmatpush3.bf16.msra.mxu0 %v2178_v4 }
  0xf9   : > { %1544 = vmatprep.subr.bf16.mxu0 %v1946_v0 }
  0xfc   : > { %1545 = vmatpush3.bf16.msra.mxu0 %v2183_v5 }
  0xfd   : > { %1546 = vmatprep.subr.bf16.mxu0 %v1946_v0 }
 0x100   : > { %1547 = vmatpush3.bf16.msra.mxu0 %v2187_v6 }
 0x101   : > { %1548 = vmatprep.subr.bf16.mxu0 %v1946_v0 }
 0x104   : > { %1549 = vmatpush3.bf16.msra.mxu0 %v2191_v7 }
 0x105   : > { %1550 = vmatprep.subr.bf16.mxu0 %v1946_v0 }
 0x108   : > { %1551 = vmatpush3.bf16.msra.mxu0 %v2195_v8 }
 0x109   : > { %1576 = vmatprep.subr.bf16.mxu0 %v1946_v0 }
 0x10b   : > { %1553 = vmatmul.mubr.bf16.vlgmr.msra.gmra.mrb[16].mxu0 %v752_v21 }
 0x10c   : > { %1577 = vmatpush3.bf16.msra.mxu0 %v2168_v1  ;;  %1592 = vmatprep.mubr.msk.bf16.mxu0 %vm1947_vm0, %v1946_v0 }
 0x10d   : > { %1578 = vmatprep.subr.bf16.mxu0 %v1946_v0 }
 0x110   : > { %1579 = vmatpush3.bf16.msra.mxu0 %v2171_v2 }
 0x111   : > { %1580 = vmatprep.subr.bf16.mxu0 %v1946_v0 }
 0x114   : > { %1581 = vmatpush3.bf16.msra.mxu0 %v2175_v3 }
 0x115   : > { %1582 = vmatprep.subr.bf16.mxu0 %v1946_v0 }
 0x118   : > { %1583 = vmatpush3.bf16.msra.mxu0 %v2178_v4 }
 0x119   : > { %1584 = vmatprep.subr.bf16.mxu0 %v1946_v0 }
 0x11c   : > { %1585 = vmatpush3.bf16.msra.mxu0 %v2183_v5 }
 0x11d   : > { %1586 = vmatprep.subr.bf16.mxu0 %v1946_v0 }
 0x120   : > { %1587 = vmatpush3.bf16.msra.mxu0 %v2187_v6 }
 0x121   : > { %1588 = vmatprep.subr.bf16.mxu0 %v1946_v0 }
 0x124   : > { %1589 = vmatpush3.bf16.msra.mxu0 %v2191_v7 }
 0x125   : > { %1590 = vmatprep.subr.bf16.mxu0 %v1946_v0 }
 0x128   : > { %1591 = vmatpush3.bf16.msra.mxu0 %v2195_v8 }
 0x129   : > { %1616 = vmatprep.subr.bf16.mxu0 %v1946_v0 }
 0x12b   : > { %1593 = vmatmul.mubr.bf16.vlgmr.msra.gmra.mrb[20].mxu0 %v837_v22 }
 0x12c   : > { %1617 = vmatpush3.bf16.msra.mxu0 %v2168_v1  ;;  %1632 = vmatprep.mubr.msk.bf16.mxu0 %vm1947_vm0, %v1946_v0 }
 0x12d   : > { %1618 = vmatprep.subr.bf16.mxu0 %v1946_v0 }
 0x130   : > { %1619 = vmatpush3.bf16.msra.mxu0 %v2171_v2 }
 0x131   : > { %1620 = vmatprep.subr.bf16.mxu0 %v1946_v0 }
 0x134   : > { %1621 = vmatpush3.bf16.msra.mxu0 %v2175_v3 }
 0x135   : > { %1622 = vmatprep.subr.bf16.mxu0 %v1946_v0 }
 0x138   : > { %1623 = vmatpush3.bf16.msra.mxu0 %v2178_v4 }
 0x139   : > { %1624 = vmatprep.subr.bf16.mxu0 %v1946_v0 }
 0x13c   : > { %1625 = vmatpush3.bf16.msra.mxu0 %v2183_v5 }
 0x13d   : > { %1626 = vmatprep.subr.bf16.mxu0 %v1946_v0 }
 0x140   : > { %1627 = vmatpush3.bf16.msra.mxu0 %v2187_v6 }
 0x141   : > { %1628 = vmatprep.subr.bf16.mxu0 %v1946_v0 }
 0x144   : > { %1629 = vmatpush3.bf16.msra.mxu0 %v2191_v7 }
 0x145   : > { %1630 = vmatprep.subr.bf16.mxu0 %v1946_v0 }
 0x148   : > { %1631 = vmatpush3.bf16.msra.mxu0 %v2195_v8 }
 0x149   : > { %1656 = vmatprep.subr.bf16.mxu0 %v1946_v0 }
 0x14b   : > { %1633 = vmatmul.mubr.bf16.vlgmr.msra.gmra.mrb[24].mxu0 %v922_v23 }
 0x14c   : > { %1657 = vmatpush3.bf16.msra.mxu0 %v2168_v1  ;;  %1672 = vmatprep.mubr.msk.bf16.mxu0 %vm1947_vm0, %v1946_v0 }
 0x14d   : > { %1658 = vmatprep.subr.bf16.mxu0 %v1946_v0 }
 0x150   : > { %1659 = vmatpush3.bf16.msra.mxu0 %v2171_v2 }
 0x151   : > { %1660 = vmatprep.subr.bf16.mxu0 %v1946_v0 }
 0x154   : > { %1661 = vmatpush3.bf16.msra.mxu0 %v2175_v3 }
 0x155   : > { %1662 = vmatprep.subr.bf16.mxu0 %v1946_v0 }
 0x158   : > { %1663 = vmatpush3.bf16.msra.mxu0 %v2178_v4 }
 0x159   : > { %1664 = vmatprep.subr.bf16.mxu0 %v1946_v0 }
 0x15c   : > { %1665 = vmatpush3.bf16.msra.mxu0 %v2183_v5 }
 0x15d   : > { %1666 = vmatprep.subr.bf16.mxu0 %v1946_v0 }
 0x15e   : > { %v394_v25 = vpop.f32.mrb[0].mxu0 }
 0x15f   : > { %v395_v26 = vadd.f32 %v2361_v24, %v394_v25  ;;  %v1394_v27 = vpop.f32.mrb[1].mxu0 }
 0x160   : > { %v397_v28 = vpop.f32.mrb[2].mxu0  ;;  %1667 = vmatpush3.bf16.msra.mxu0 %v2187_v6 }
 0x161   : > { %v400_v29 = vmax.f32 %v395_v26, 0.0  ;;  %v1395_v30 = vpop.f32.mrb[3].mxu0  ;;  %1668 = vmatprep.subr.bf16.mxu0 %v1946_v0 }
 0x163   : > { %v401_v31 = vpack.c.bf16 %v400_v29, %v400_v29 }
 0x164   : > { %1669 = vmatpush3.bf16.msra.mxu0 %v2191_v7 }
 0x165   : > { %1413 = vmatmul.mubr.bf16.vlgmr.msra.gmra.mrb[0].mxu1 %v401_v31  ;;  %1670 = vmatprep.subr.bf16.mxu0 %v1946_v0 }
 0x166   : > { %1437 = vmatpush3.bf16.msra.mxu1 %v2235_v11  ;;  %1452 = vmatprep.mubr.msk.bf16.mxu1 %vm1947_vm0, %v1946_v0 }
 0x167   : > { %1438 = vmatprep.subr.bf16.mxu1 %v1946_v0 }
 0x168   : > { %1671 = vmatpush3.bf16.msra.mxu0 %v2195_v8 }
 0x16a   : > { %1439 = vmatpush3.bf16.msra.mxu1 %v2242_v13 }
 0x16b   : > { %1673 = vmatmul.mubr.bf16.vlgmr.msra.gmra.mrb[28].mxu0 %v1007_v32  ;;  %1440 = vmatprep.subr.bf16.mxu1 %v1946_v0 }
 0x16e   : > { %1441 = vmatpush3.bf16.msra.mxu1 %v2250_v14 }
 0x16f   : > { %1442 = vmatprep.subr.bf16.mxu1 %v1946_v0 }
 0x172   : > { %1443 = vmatpush3.bf16.msra.mxu1 %v2256_v15 }
 0x173   : > { %1444 = vmatprep.subr.bf16.mxu1 %v1946_v0 }
 0x176   : > { %1445 = vmatpush3.bf16.msra.mxu1 %v2262_v16 }
 0x177   : > { %1446 = vmatprep.subr.bf16.mxu1 %v1946_v0 }
 0x17a   : > { %1447 = vmatpush3.bf16.msra.mxu1 %v2268_v17 }
 0x17b   : > { %1448 = vmatprep.subr.bf16.mxu1 %v1946_v0 }
 0x17e   : > { %v532_v33 = vpop.f32.mrb[4].mxu0  ;;  %1449 = vmatpush3.bf16.msra.mxu1 %v2274_v18 }
 0x17f   : > { %v533_v34 = vadd.f32 %v2361_v24, %v532_v33  ;;  %v1434_v35 = vpop.f32.mrb[5].mxu0  ;;  %1450 = vmatprep.subr.bf16.mxu1 %v1946_v0 }
 0x180   : > { %v535_v36 = vpop.f32.mrb[6].mxu0 }
 0x181   : > { %v538_v37 = vmax.f32 %v533_v34, 0.0  ;;  %v1435_v38 = vpop.f32.mrb[7].mxu0 }
 0x182   : > { %1451 = vmatpush3.bf16.msra.mxu1 %v2280_v19 }
 0x183   : > { %v539_v39 = vpack.c.bf16 %v538_v37, %v538_v37  ;;  %1476 = vmatprep.subr.bf16.mxu1 %v1946_v0 }
 0x185   : > { %1453 = vmatmul.mubr.bf16.vlgmr.msra.gmra.mrb[4].mxu1 %v539_v39 }
 0x186   : > { %1477 = vmatpush3.bf16.msra.mxu1 %v2235_v11  ;;  %1492 = vmatprep.mubr.msk.bf16.mxu1 %vm1947_vm0, %v1946_v0 }
 0x187   : > { %1478 = vmatprep.subr.bf16.mxu1 %v1946_v0 }
 0x18a   : > { %1479 = vmatpush3.bf16.msra.mxu1 %v2242_v13 }
 0x18b   : > { %1480 = vmatprep.subr.bf16.mxu1 %v1946_v0 }
 0x18e   : > { %1481 = vmatpush3.bf16.msra.mxu1 %v2250_v14 }
 0x18f   : > { %1482 = vmatprep.subr.bf16.mxu1 %v1946_v0 }
 0x192   : > { %1483 = vmatpush3.bf16.msra.mxu1 %v2256_v15 }
 0x193   : > { %1484 = vmatprep.subr.bf16.mxu1 %v1946_v0 }
 0x196   : > { %1485 = vmatpush3.bf16.msra.mxu1 %v2262_v16 }
 0x197   : > { %1486 = vmatprep.subr.bf16.mxu1 %v1946_v0 }
 0x19a   : > { %1487 = vmatpush3.bf16.msra.mxu1 %v2268_v17 }
 0x19b   : > { %1488 = vmatprep.subr.bf16.mxu1 %v1946_v0 }
 0x19e   : > { %v617_v40 = vpop.f32.mrb[8].mxu0  ;;  %1489 = vmatpush3.bf16.msra.mxu1 %v2274_v18 }
 0x19f   : > { %v618_v41 = vadd.f32 %v2361_v24, %v617_v40  ;;  %v1474_v42 = vpop.f32.mrb[9].mxu0  ;;  %1490 = vmatprep.subr.bf16.mxu1 %v1946_v0 }
 0x1a0   : > { %v620_v43 = vpop.f32.mrb[10].mxu0 }
 0x1a1   : > { %v623_v44 = vmax.f32 %v618_v41, 0.0  ;;  %v1475_v45 = vpop.f32.mrb[11].mxu0 }
 0x1a2   : > { %1491 = vmatpush3.bf16.msra.mxu1 %v2280_v19 }
 0x1a3   : > { %v624_v46 = vpack.c.bf16 %v623_v44, %v623_v44  ;;  %1516 = vmatprep.subr.bf16.mxu1 %v1946_v0 }
 0x1a5   : > { %1493 = vmatmul.mubr.bf16.vlgmr.msra.gmra.mrb[8].mxu1 %v624_v46 }
 0x1a6   : > { %1517 = vmatpush3.bf16.msra.mxu1 %v2235_v11  ;;  %1532 = vmatprep.mubr.msk.bf16.mxu1 %vm1947_vm0, %v1946_v0 }
 0x1a7   : > { %1518 = vmatprep.subr.bf16.mxu1 %v1946_v0 }
 0x1aa   : > { %1519 = vmatpush3.bf16.msra.mxu1 %v2242_v13 }
 0x1ab   : > { %1520 = vmatprep.subr.bf16.mxu1 %v1946_v0 }
 0x1ae   : > { %1521 = vmatpush3.bf16.msra.mxu1 %v2250_v14 }
 0x1af   : > { %1522 = vmatprep.subr.bf16.mxu1 %v1946_v0 }
 0x1b2   : > { %1523 = vmatpush3.bf16.msra.mxu1 %v2256_v15 }
 0x1b3   : > { %1524 = vmatprep.subr.bf16.mxu1 %v1946_v0 }
 0x1b6   : > { %1525 = vmatpush3.bf16.msra.mxu1 %v2262_v16 }
 0x1b7   : > { %1526 = vmatprep.subr.bf16.mxu1 %v1946_v0 }
 0x1ba   : > { %1527 = vmatpush3.bf16.msra.mxu1 %v2268_v17 }
 0x1bb   : > { %1528 = vmatprep.subr.bf16.mxu1 %v1946_v0 }
 0x1be   : > { %v702_v47 = vpop.f32.mrb[12].mxu0  ;;  %1529 = vmatpush3.bf16.msra.mxu1 %v2274_v18 }
 0x1bf   : > { %v703_v48 = vadd.f32 %v2361_v24, %v702_v47  ;;  %v1514_v49 = vpop.f32.mrb[13].mxu0  ;;  %1530 = vmatprep.subr.bf16.mxu1 %v1946_v0 }
 0x1c0   : > { %v705_v50 = vpop.f32.mrb[14].mxu0 }
 0x1c1   : > { %v708_v51 = vmax.f32 %v703_v48, 0.0  ;;  %v1515_v52 = vpop.f32.mrb[15].mxu0 }
 0x1c2   : > { %1531 = vmatpush3.bf16.msra.mxu1 %v2280_v19 }
 0x1c3   : > { %v709_v53 = vpack.c.bf16 %v708_v51, %v708_v51  ;;  %1556 = vmatprep.subr.bf16.mxu1 %v1946_v0 }
 0x1c5   : > { %1533 = vmatmul.mubr.bf16.vlgmr.msra.gmra.mrb[12].mxu1 %v709_v53 }
 0x1c6   : > { %1557 = vmatpush3.bf16.msra.mxu1 %v2235_v11  ;;  %1572 = vmatprep.mubr.msk.bf16.mxu1 %vm1947_vm0, %v1946_v0 }
 0x1c7   : > { %1558 = vmatprep.subr.bf16.mxu1 %v1946_v0 }
 0x1ca   : > { %1559 = vmatpush3.bf16.msra.mxu1 %v2242_v13 }
 0x1cb   : > { %1560 = vmatprep.subr.bf16.mxu1 %v1946_v0 }
 0x1ce   : > { %1561 = vmatpush3.bf16.msra.mxu1 %v2250_v14 }
 0x1cf   : > { %1562 = vmatprep.subr.bf16.mxu1 %v1946_v0 }
 0x1d2   : > { %1563 = vmatpush3.bf16.msra.mxu1 %v2256_v15 }
 0x1d3   : > { %1564 = vmatprep.subr.bf16.mxu1 %v1946_v0 }
 0x1d6   : > { %1565 = vmatpush3.bf16.msra.mxu1 %v2262_v16 }
 0x1d7   : > { %1566 = vmatprep.subr.bf16.mxu1 %v1946_v0 }
 0x1da   : > { %1567 = vmatpush3.bf16.msra.mxu1 %v2268_v17 }
 0x1db   : > { %1568 = vmatprep.subr.bf16.mxu1 %v1946_v0 }
 0x1de   : > { %v787_v54 = vpop.f32.mrb[16].mxu0  ;;  %1569 = vmatpush3.bf16.msra.mxu1 %v2274_v18 }
 0x1df   : > { %v788_v55 = vadd.f32 %v2361_v24, %v787_v54  ;;  %v1554_v56 = vpop.f32.mrb[17].mxu0  ;;  %1570 = vmatprep.subr.bf16.mxu1 %v1946_v0 }
 0x1e0   : > { %v790_v57 = vpop.f32.mrb[18].mxu0 }
 0x1e1   : > { %v793_v58 = vmax.f32 %v788_v55, 0.0  ;;  %v1555_v59 = vpop.f32.mrb[19].mxu0 }
 0x1e2   : > { %1571 = vmatpush3.bf16.msra.mxu1 %v2280_v19 }
 0x1e3   : > { %v794_v60 = vpack.c.bf16 %v793_v58, %v793_v58  ;;  %1596 = vmatprep.subr.bf16.mxu1 %v1946_v0 }
 0x1e5   : > { %1573 = vmatmul.mubr.bf16.vlgmr.msra.gmra.mrb[16].mxu1 %v794_v60 }
 0x1e6   : > { %1597 = vmatpush3.bf16.msra.mxu1 %v2235_v11  ;;  %1612 = vmatprep.mubr.msk.bf16.mxu1 %vm1947_vm0, %v1946_v0 }
 0x1e7   : > { %1598 = vmatprep.subr.bf16.mxu1 %v1946_v0 }
 0x1ea   : > { %1599 = vmatpush3.bf16.msra.mxu1 %v2242_v13 }
 0x1eb   : > { %1600 = vmatprep.subr.bf16.mxu1 %v1946_v0 }
 0x1ee   : > { %1601 = vmatpush3.bf16.msra.mxu1 %v2250_v14 }
 0x1ef   : > { %1602 = vmatprep.subr.bf16.mxu1 %v1946_v0 }
 0x1f2   : > { %1603 = vmatpush3.bf16.msra.mxu1 %v2256_v15 }
 0x1f3   : > { %1604 = vmatprep.subr.bf16.mxu1 %v1946_v0 }
 0x1f6   : > { %1605 = vmatpush3.bf16.msra.mxu1 %v2262_v16 }
 0x1f7   : > { %1606 = vmatprep.subr.bf16.mxu1 %v1946_v0 }
 0x1fa   : > { %1607 = vmatpush3.bf16.msra.mxu1 %v2268_v17 }
 0x1fb   : > { %1608 = vmatprep.subr.bf16.mxu1 %v1946_v0 }
 0x1fe   : > { %v872_v61 = vpop.f32.mrb[20].mxu0  ;;  %1609 = vmatpush3.bf16.msra.mxu1 %v2274_v18 }
 0x1ff   : > { %v873_v62 = vadd.f32 %v2361_v24, %v872_v61  ;;  %v1594_v63 = vpop.f32.mrb[21].mxu0  ;;  %1610 = vmatprep.subr.bf16.mxu1 %v1946_v0 }
 0x200   : > { %v875_v1 = vpop.f32.mrb[22].mxu0 }
 0x201   : > { %v878_v2 = vmax.f32 %v873_v62, 0.0  ;;  %v1595_v3 = vpop.f32.mrb[23].mxu0 }
 0x202   : > { %1611 = vmatpush3.bf16.msra.mxu1 %v2280_v19 }
 0x203   : > { %v879_v4 = vpack.c.bf16 %v878_v2, %v878_v2  ;;  %1636 = vmatprep.subr.bf16.mxu1 %v1946_v0 }
 0x205   : > { %1613 = vmatmul.mubr.bf16.vlgmr.msra.gmra.mrb[20].mxu1 %v879_v4 }
 0x206   : > { %1637 = vmatpush3.bf16.msra.mxu1 %v2235_v11  ;;  %1652 = vmatprep.mubr.msk.bf16.mxu1 %vm1947_vm0, %v1946_v0 }
 0x207   : > { %1638 = vmatprep.subr.bf16.mxu1 %v1946_v0 }
 0x20a   : > { %1639 = vmatpush3.bf16.msra.mxu1 %v2242_v13 }
 0x20b   : > { %1640 = vmatprep.subr.bf16.mxu1 %v1946_v0 }
 0x20e   : > { %1641 = vmatpush3.bf16.msra.mxu1 %v2250_v14 }
 0x20f   : > { %1642 = vmatprep.subr.bf16.mxu1 %v1946_v0 }
 0x212   : > { %1643 = vmatpush3.bf16.msra.mxu1 %v2256_v15 }
 0x213   : > { %1644 = vmatprep.subr.bf16.mxu1 %v1946_v0 }
 0x216   : > { %1645 = vmatpush3.bf16.msra.mxu1 %v2262_v16 }
 0x217   : > { %1646 = vmatprep.subr.bf16.mxu1 %v1946_v0 }
 0x21a   : > { %1647 = vmatpush3.bf16.msra.mxu1 %v2268_v17 }
 0x21b   : > { %1648 = vmatprep.subr.bf16.mxu1 %v1946_v0 }
 0x21e   : > { %v957_v5 = vpop.f32.mrb[24].mxu0  ;;  %1649 = vmatpush3.bf16.msra.mxu1 %v2274_v18 }
 0x21f   : > { %v958_v6 = vadd.f32 %v2361_v24, %v957_v5  ;;  %v1634_v7 = vpop.f32.mrb[25].mxu0  ;;  %1650 = vmatprep.subr.bf16.mxu1 %v1946_v0 }
 0x220   : > { %v960_v8 = vpop.f32.mrb[26].mxu0 }
 0x221   : > { %v963_v9 = vmax.f32 %v958_v6, 0.0  ;;  %v1635_v10 = vpop.f32.mrb[27].mxu0 }
 0x222   : > { %1651 = vmatpush3.bf16.msra.mxu1 %v2280_v19 }
 0x223   : > { %v964_v12 = vpack.c.bf16 %v963_v9, %v963_v9  ;;  %1676 = vmatprep.subr.bf16.mxu1 %v1946_v0 }
 0x225   : > { %1653 = vmatmul.mubr.bf16.vlgmr.msra.gmra.mrb[24].mxu1 %v964_v12 }
 0x226   : > { %1677 = vmatpush3.bf16.msra.mxu1 %v2235_v11  ;;  %1692 = vmatprep.mubr.msk.bf16.mxu1 %vm1947_vm0, %v1946_v0 }
 0x227   : > { %1678 = vmatprep.subr.bf16.mxu1 %v1946_v0 }
 0x22a   : > { %1679 = vmatpush3.bf16.msra.mxu1 %v2242_v13 }
 0x22b   : > { %1680 = vmatprep.subr.bf16.mxu1 %v1946_v0 }
 0x22e   : > { %1681 = vmatpush3.bf16.msra.mxu1 %v2250_v14 }
 0x22f   : > { %1682 = vmatprep.subr.bf16.mxu1 %v1946_v0 }
 0x232   : > { %1683 = vmatpush3.bf16.msra.mxu1 %v2256_v15 }
 0x233   : > { %1684 = vmatprep.subr.bf16.mxu1 %v1946_v0 }
 0x236   : > { %1685 = vmatpush3.bf16.msra.mxu1 %v2262_v16 }
 0x237   : > { %1686 = vmatprep.subr.bf16.mxu1 %v1946_v0 }
 0x238   : > { %v490_v11 = vpop.f32.mrb[0].mxu1 }
 0x239   : > { %v1414_v20 = vpop.f32.mrb[1].mxu1 }
 0x23a   : > { %v493_v21 = vpop.f32.mrb[2].mxu1  ;;  %1687 = vmatpush3.bf16.msra.mxu1 %v2268_v17  ;;  %v1218_v17 = vld [vmem:[%s2559_s4] ss:$0 sm:$0xff] }
 0x23b   : > { %v1415_v13 = vpop.f32.mrb[3].mxu1  ;;  %1688 = vmatprep.subr.bf16.mxu1 %v1946_v0  ;;  %v491_v27 = vadd.f32 %v1218_v17, %v490_v11 }
 0x23e   : > { %v1042_v22 = vpop.f32.mrb[28].mxu0  ;;  %1689 = vmatpush3.bf16.msra.mxu1 %v2274_v18 }
 0x23f   : > { %v1043_v14 = vadd.f32 %v2361_v24, %v1042_v22  ;;  %v1674_v15 = vpop.f32.mrb[29].mxu0  ;;  %1690 = vmatprep.subr.bf16.mxu1 %v1946_v0  ;;  %v496_v24 = vmax.f32 %v491_v27, 0.0 }
 0x240   : > { %v1045_v23 = vpop.f32.mrb[30].mxu0 }
 0x241   : > { %v1048_v16 = vmax.f32 %v1043_v14, 0.0  ;;  %v1675_v25 = vpop.f32.mrb[31].mxu0 }
 0x242   : > { %1691 = vmatpush3.bf16.msra.mxu1 %v2280_v19 }
 0x243   : > { %v1049_v26 = vpack.c.bf16 %v1048_v16, %v1048_v16 }
 0x245   : > { %1693 = vmatmul.mubr.bf16.vlgmr.msra.gmra.mrb[28].mxu1 %v1049_v26 }
 0x258   : > { %v574_v28 = vpop.f32.mrb[4].mxu1 }
 0x259   : > { %v575_v29 = vadd.f32 %v1218_v17, %v574_v28  ;;  %v1454_v18 = vpop.f32.mrb[5].mxu1 }
 0x25a   : > { %v577_v30 = vpop.f32.mrb[6].mxu1 }
 0x25b   : > { %v580_v31 = vmax.f32 %v575_v29, 0.0  ;;  %v1455_v32 = vpop.f32.mrb[7].mxu1 }
 0x25d   : > { %v581_v0 = vmax.f32 %v496_v24, %v580_v31 }
 0x278   : > { %v659_v33 = vpop.f32.mrb[8].mxu1 }
 0x279   : > { %v660_v34 = vadd.f32 %v1218_v17, %v659_v33  ;;  %v1494_v35 = vpop.f32.mrb[9].mxu1 }
 0x27a   : > { %v662_v36 = vpop.f32.mrb[10].mxu1 }
 0x27b   : > { %v665_v19 = vmax.f32 %v660_v34, 0.0  ;;  %v1495_v37 = vpop.f32.mrb[11].mxu1 }
 0x27d   : > { %v666_v38 = vmax.f32 %v581_v0, %v665_v19 }
 0x298   : > { %v744_v39 = vpop.f32.mrb[12].mxu1 }
 0x299   : > { %v745_v40 = vadd.f32 %v1218_v17, %v744_v39  ;;  %v1534_v41 = vpop.f32.mrb[13].mxu1 }
 0x29a   : > { %v747_v42 = vpop.f32.mrb[14].mxu1 }
 0x29b   : > { %v750_v43 = vmax.f32 %v745_v40, 0.0  ;;  %v1535_v44 = vpop.f32.mrb[15].mxu1 }
 0x29d   : > { %v751_v45 = vmax.f32 %v666_v38, %v750_v43 }
 0x2b8   : > { %v829_v46 = vpop.f32.mrb[16].mxu1 }
 0x2b9   : > { %v830_v47 = vadd.f32 %v1218_v17, %v829_v46  ;;  %v1574_v48 = vpop.f32.mrb[17].mxu1 }
 0x2ba   : > { %v832_v49 = vpop.f32.mrb[18].mxu1 }
 0x2bb   : > { %v835_v50 = vmax.f32 %v830_v47, 0.0  ;;  %v1575_v51 = vpop.f32.mrb[19].mxu1 }
 0x2bd   : > { %v836_v52 = vmax.f32 %v751_v45, %v835_v50 }
 0x2d8   : > { %v914_v53 = vpop.f32.mrb[20].mxu1 }
 0x2d9   : > { %v915_v54 = vadd.f32 %v1218_v17, %v914_v53  ;;  %v1614_v55 = vpop.f32.mrb[21].mxu1 }
 0x2da   : > { %v917_v56 = vpop.f32.mrb[22].mxu1 }
 0x2db   : > { %v920_v57 = vmax.f32 %v915_v54, 0.0  ;;  %v1615_v58 = vpop.f32.mrb[23].mxu1 }
 0x2dd   : > { %v921_v59 = vmax.f32 %v836_v52, %v920_v57 }
 0x2f8   : > { %v999_v60 = vpop.f32.mrb[24].mxu1 }
 0x2f9   : > { %v1000_v61 = vadd.f32 %v1218_v17, %v999_v60  ;;  %v1654_v62 = vpop.f32.mrb[25].mxu1 }
 0x2fa   : > { %v1002_v63 = vpop.f32.mrb[26].mxu1 }
 0x2fb   : > { %v1005_v1 = vmax.f32 %v1000_v61, 0.0  ;;  %v1655_v2 = vpop.f32.mrb[27].mxu1 }
 0x2fd   : > { %v1006_v3 = vmax.f32 %v921_v59, %v1005_v1 }
 0x318   : > { %v1084_v4 = vpop.f32.mrb[28].mxu1 }
 0x319   : > { %v1085_v5 = vadd.f32 %v1218_v17, %v1084_v4  ;;  %v1694_v6 = vpop.f32.mrb[29].mxu1 }
 0x31a   : > { %v1087_v7 = vpop.f32.mrb[30].mxu1 }
 0x31b   : > { %v1090_v8 = vmax.f32 %v1085_v5, 0.0  ;;  %v1695_v9 = vpop.f32.mrb[31].mxu1 }
 0x31d   : > { %v1091_v10 = vmax.f32 %v1006_v3, %v1090_v8 }
 0x31f   : > { %1092 = vst [vmem:[%s269_s7] sm:$0xff] %v1091_v10 }
 0x320   : > { %1882 = shalt.err (!%p1879_p2)
}
 0x321   : > { %s1883_s12 = scalar_lea.hbm %s2511_s16, 128  ;;  %s1887_s8 = scalar_lea.hbm %s2560_s5, 256 }
 0x322   : > { %p1884_p13 = scmp.ne.s32.totalorder %s2511_s16, %s1883_s12  ;;  %p1888_p4 = scmp.lt.u32.totalorder %s2511_s16, %s2560_s5 }
 0x323   : > { %p1889_p5 = scmp.lt.u32.totalorder %s1887_s8, %s1883_s12  ;;  %p1891_p11 = scmp.lt.u32.totalorder %s1883_s12, %s2511_s16 }
 0x324   : > { %p1885_p6 = pnand %p1884_p13, %p2574_p0 }
 0x325   : > { %p1890_p8 = por %p1889_p5, %p1888_p4 }
 0x326   : > { %p1886_p10 = pneg %p1885_p6 }
 0x327   : > { %p1892_p1 = por %p1891_p11, %p1890_p8 }
 0x329   : > { %p1893_p3 = pnand %p1892_p1, %p1886_p10 }
 0x32b   : > { %1896 = shalt.err (!%p1893_p3)
}
 0x32c   : > { %1706 = dma.vmem_to_hbm [thread:$0]  (%p2574_p0), %s2513_s6, 128, %s2511_s16, %s1094_s9  }
 0x32d PF: > { %s1119_s28 = sand.u32 1, %s1927_s18   ;;  %p2575_p7 = scmp.ne.s32.totalorder %s2565_s25, 0 }
 0x32e   : > { %p2576_p9 = scmp.ge.s32.totalorder %s1939_s21, 2  ;;  %s1120_s7 = scalar_lea.sflag [#allocation4], %s1119_s28 }
 0x330   : > { %p1720_p12 = pnand %p2576_p9, %p2575_p7 }
 0x332   : > { %1922 = dma.done.wait (!%p1720_p12), %s1120_s7, 128  }
 0x333   : > { %1924 = vsyncadd (!%p1720_p12), %s1120_s7, 4294967168  ;;  %p19_p2 = scmp.ge.s32.totalorder %s2089_s14, 4   ;;  %s2577_s18 = smov %s1931_s19 }
 0x334   : > { %s2578_s19 = smov %s1935_s20  ;;  %s2579_s20 = smov %s2105_s27 }
 0x335   : > { %s2580_s21 = smov %s2089_s14  ;;  %21 = sbr.rel (!%p19_p2) target bundleno = 6 (0x6), region = 93 }
 0x33c   :  { %1125 = vsyncpa [#allocation3], 1 }
 0x33d   :  { %1127 = vsyncpa [#allocation3 + $0x1], 1 }
 0x33e   :  { %1128 = vsyncpa [#allocation6], 1 }
 0x33f   :  { %1129 = vsyncpa [#allocation4], 1 }
 0x340   :  { %1131 = vsyncpa [#allocation4 + $0x1], 1 }

</bundles_post_ra>
